<compile_context>
chip_gen: v5e
topology: v5e:2x2
jax: 0.10.0
libtpu: 0.0.40
codegen_flags: <defaults>
</compile_context>

<pallas_src>
import jax
import jax.numpy as jnp
from jax.experimental import pallas as pl
from jax.experimental.pallas import tpu as pltpu


def _transpose_kernel(x_ref, o_ref):
    # x_ref: (bB, tT, tC) VMEM tile ; o_ref: (bB, tC, tT) VMEM tile.
    # Swap of the last two axes lowers to whole-vreg XLU transposes when the
    # tile dims are (8,128)-aligned.
    o_ref[...] = jnp.transpose(x_ref[...], (0, 2, 1))


def _pick_block(dim: int, target: int) -> int:
    """Block size for one of the (T, C) axes.

    - dim <  128     : full extent (legal; masked stores, but tiny anyway).
    - dim >= target  : the 128-aligned target tile.
    - otherwise      : largest multiple of 128 that is <= dim, so the block
                       never exceeds the array extent while lane dims stay
                       128-aligned (edge raggedness is handled by clipping).
    """
    if dim < 128:
        return dim
    if dim >= target:
        return target
    return (dim // 128) * 128


def transpose_pallas(x: jnp.ndarray, dim0: int = 1, dim1: int = 2,
                     *, target_tile: int = 512,
                     fast_path_bytes: int = 64 * 1024) -> jnp.ndarray:
    """Pallas equivalent of torch.transpose(x, dim0, dim1).

    Specialized (Pallas) path for 3-D (B, T, C) tensors with
    (dim0, dim1) == (1, 2) -- the configuration used in the Conformer.
    Other configurations fall back to jnp.swapaxes.
    """
    if x.ndim != 3 or {dim0, dim1} != {1, 2}:
        # Generic fallback for shapes/axes the kernel is not specialized for.
        return jnp.swapaxes(x, dim0, dim1)

    B, T, C = x.shape
    dtype = x.dtype
    itemsize = dtype.itemsize
    total_bytes = B * T * C * itemsize

    # Small-size fast path: launch/grid overhead dominates and XLA can fuse
    # the swap into the consumer for free.
    if total_bytes <= fast_path_bytes:
        return jnp.swapaxes(x, 1, 2)

    assert target_tile % 128 == 0, "target_tile must be a multiple of 128"
    tT = _pick_block(T, target_tile)
    tC = _pick_block(C, target_tile)

    # Pack several batch slabs per block (~<= 2 MiB) to amortize per-step
    # overhead when a single (T, C) slab is small.  2 MiB * (2 in + 2 out
    # buffers) = 8 MiB VMEM: safe on v5e/v6e/v7x scoped defaults.
    slab_bytes = tT * tC * itemsize
    target_block_bytes = 2 * 1024 * 1024
    bB = int(max(1, min(B, target_block_bytes // max(slab_bytes, 1))))

    grid = (pl.cdiv(B, bB), pl.cdiv(T, tT), pl.cdiv(C, tC))

    return pl.pallas_call(
        _transpose_kernel,
        out_shape=jax.ShapeDtypeStruct((B, C, T), dtype),
        grid_spec=pltpu.PrefetchScalarGridSpec(
            num_scalar_prefetch=0,
            grid=grid,
            in_specs=[
                pl.BlockSpec((bB, tT, tC), lambda b, i, j: (b, i, j)),
            ],
            out_specs=pl.BlockSpec((bB, tC, tT), lambda b, i, j: (b, j, i)),
        ),
        compiler_params=pltpu.CompilerParams(
            # Pure data movement, no reduction: every grid axis is
            # independent -> shard freely across v7x's 2 TensorCores.
            dimension_semantics=("parallel", "parallel", "parallel"),
        ),
        cost_estimate=pl.CostEstimate(
            flops=0,
            transcendentals=0,
            bytes_accessed=2 * total_bytes,
        ),
    )(x)


if __name__ == "__main__":
    key = jax.random.PRNGKey(0)
    k1, k2, k3 = jax.random.split(key, 3)

    # Case 1: the Conformer-style small shape (batch=2, seq=8, hidden=32).
    #  (a) default call -> tiny-tensor fast path.
    #  (b) forced Pallas path (full-extent blocks, grid (1,1,1)).
    x1 = jax.random.normal(k1, (2, 8, 32), dtype=jnp.float32)
    ref1 = jnp.transpose(x1, (0, 2, 1))
    y1a = jax.block_until_ready(transpose_pallas(x1, 1, 2))
    y1b = jax.block_until_ready(transpose_pallas(x1, 1, 2, fast_path_bytes=0))
    assert y1a.shape == (2, 32, 8) and jnp.array_equal(y1a, ref1)
    assert y1b.shape == (2, 32, 8) and jnp.array_equal(y1b, ref1)

    # Case 2: multi-tile grid with ragged edges in BOTH T and C -- exercises
    # the new no-pad/no-slice edge-clipping path (small target tile to keep
    # the test tiny).
    x2 = jax.random.normal(k2, (2, 200, 144), dtype=jnp.float32)
    ref2 = jnp.transpose(x2, (0, 2, 1))
    y2 = jax.block_until_ready(transpose_pallas(x2, 1, 2, target_tile=128))
    assert y2.shape == (2, 144, 200) and jnp.array_equal(y2, ref2)

    # Case 3: default 512 tiling with a ragged T (second T block is partial)
    # and a mid-size 128-aligned C block, batch packed into one block.
    x3 = jax.random.normal(k3, (2, 520, 384), dtype=jnp.float32)
    ref3 = jnp.transpose(x3, (0, 2, 1))
    y3 = jax.block_until_ready(transpose_pallas(x3, 1, 2))
    assert y3.shape == (2, 384, 520) and jnp.array_equal(y3, ref3)

    print("KERNEL_OK")
</pallas_src>

<mosaic_0001>
module attributes {stable_mosaic.version = 11 : i64} {
  func.func @_transpose_kernel(%arg0: i32, %arg1: i32, %arg2: i32, %arg3: memref<2x8x32xf32, #tpu.memory_space<vmem>>, %arg4: memref<2x32x8xf32, #tpu.memory_space<vmem>>) attributes {dimension_semantics = [#tpu.dimension_semantics<parallel>, #tpu.dimension_semantics<parallel>, #tpu.dimension_semantics<parallel>], iteration_bounds = array<i64: 1, 1, 1>, scalar_prefetch = 0 : i64, scratch_operands = 0 : i64, tpu.core_type = #tpu.core_type<tc>, window_params = [{transform_indices = @transform_0, window_bounds = array<i64: 2, 8, 32>}, {transform_indices = @transform_1, window_bounds = array<i64: 2, 32, 8>}]} {
    %c0 = arith.constant 0 : index
    %c0_0 = arith.constant 0 : index
    %c0_1 = arith.constant 0 : index
    %0 = vector.load %arg3[%c0, %c0_0, %c0_1] : memref<2x8x32xf32, #tpu.memory_space<vmem>>, vector<2x8x32xf32>
    %1 = tpu.transpose %0, [0, 2, 1] : vector<2x8x32xf32> -> vector<2x32x8xf32>
    %c0_2 = arith.constant 0 : index
    %c0_3 = arith.constant 0 : index
    %c0_4 = arith.constant 0 : index
    %2 = vector.load %arg4[%c0_2, %c0_3, %c0_4] : memref<2x32x8xf32, #tpu.memory_space<vmem>>, vector<2x32x8xf32>
    tpu.vector_store %arg4[%c0_2, %c0_3, %c0_4], %1 {strides = array<i32>} : memref<2x32x8xf32, #tpu.memory_space<vmem>>, vector<2x32x8xf32>,
    return
  }
  func.func @transform_0(%arg0: i32, %arg1: i32, %arg2: i32) -> (i32, i32, i32) {
    %c0_i32 = arith.constant 0 : i32
    return %arg0, %arg1, %arg2 : i32, i32, i32
  }
  func.func @transform_1(%arg0: i32, %arg1: i32, %arg2: i32) -> (i32, i32, i32) {
    %c0_i32 = arith.constant 0 : i32
    return %arg0, %arg2, %arg1 : i32, i32, i32
  }
}

</mosaic_0001>

<bundles_post_ra>
// kernel: tpu_custom_call.1
= control target key start
LH: loop header
LB: loop body
LE: loop exit
PB: predicated region body
PF: predicated region fallthrough
CT: control target
= control target key end

     0   :  { %6 = vsyncpa [#allocation3], 0  ;;  %s134_s9 = smov [#allocation2]   ;;  %s135_s11 = smov 128   ;;  %s182_s0 = inlined_call_operand.hbm [shape: f32[2,8,32], index: 0, kind: input, shape index: {}]   ;;  %s183_s1 = inlined_call_operand.vmem [shape: f32[2,32,8], index: 1, kind: output, shape index: {}]  }
   0x1   :  { %s11_s8 = sshll.u32 %s182_s0, 4  ;;  %s13_s10 = sshll.u32 %s134_s9, 4  ;;  %s12_s8 = int_to_ptr.hbm [resolvable:$true] %s11_s8  ;;  %s14_s10 = int_to_ptr.vmem [resolvable:$true] %s13_s10 }
   0x2   :  { %s136_s12 = smov 8  }
   0x3   :  { %19 = dma.hbm_to_vmem [thread:$0]  %s12_s8, 256, %s14_s10, [#allocation3], %s135_s11, %s135_s11, %s136_s12  }
   0x4   :  { %132 = dma.done.wait [#allocation3], 256  }
   0x5   :  { %133 = vsyncadd [#allocation3], 4294967040  ;;  %v24_v0 = vld [vmem:[#allocation2] sm:$0xff]  ;;  %v25_v1 = vld [vmem:[#allocation2 + $0x8] sm:$0xff]  ;;  %vm90_vm0 = vcmask 64512  }
   0x6   :  { %26 = vxpose.xlu0.b32.start.end [1/1] (short) (narrow) %v24_v0, 32 }
  0x26   :  { %58 = vxpose.xlu0.b32.start.end [1/1] (short) (narrow) %v25_v1, 32 }
  0xaa   :  { %v42_v2 = vpop.trf.xlu0 }
  0xab   :  { %91 = vst.msk [vmem:[%s183_s1] sm:$0xff] %vm90_vm0, %v42_v2 }
  0xb2   :  { %v43_v3 = vpop.trf.xlu0 }
  0xb3   :  { %92 = vst.msk [vmem:[%s183_s1 + $0x8] sm:$0xff] %vm90_vm0, %v43_v3 }
  0xba   :  { %v44_v4 = vpop.trf.xlu0 }
  0xbb   :  { %93 = vst.msk [vmem:[%s183_s1 + $0x10] sm:$0xff] %vm90_vm0, %v44_v4 }
  0xc2   :  { %v45_v5 = vpop.trf.xlu0 }
  0xc3   :  { %94 = vst.msk [vmem:[%s183_s1 + $0x18] sm:$0xff] %vm90_vm0, %v45_v5 }
  0xca   :  { %v74_v6 = vpop.trf.xlu0 }
  0xcb   :  { %95 = vst.msk [vmem:[%s183_s1 + $0x20] sm:$0xff] %vm90_vm0, %v74_v6 }
  0xd2   :  { %v75_v7 = vpop.trf.xlu0 }
  0xd3   :  { %96 = vst.msk [vmem:[%s183_s1 + $0x28] sm:$0xff] %vm90_vm0, %v75_v7 }
  0xda   :  { %v76_v8 = vpop.trf.xlu0 }
  0xdb   :  { %97 = vst.msk [vmem:[%s183_s1 + $0x30] sm:$0xff] %vm90_vm0, %v76_v8 }
  0xe2   :  { %v77_v9 = vpop.trf.xlu0 }
  0xe3   :  { %98 = vst.msk [vmem:[%s183_s1 + $0x38] sm:$0xff] %vm90_vm0, %v77_v9 }
  0xe4   :  { %103 = vsyncpa [#allocation3], 1 }

</bundles_post_ra>
